<compile_context>
chip_gen: v7x
topology: tpu7x:2x2x1
jax: 0.10.0
libtpu: 0.0.40
codegen_flags: <defaults>
</compile_context>

<pallas_src>
import jax
import jax.numpy as jnp
from jax.experimental import pallas as pl
from jax.experimental.pallas import tpu as pltpu

NUM_ACTIONS = 2      # cfg.NUM_ACTIONS (synthetic config)
HIDDEN = 128
IN_FEATURES = 4
_LANE = 128          # TPU lane width


def _round_up(n, m):
    return ((n + m - 1) // m) * m


def _mlp_kernel(xt_ref, w1_ref, b1_ref, w2_ref, b2_ref, out_ref):
    """One batch tile in transposed layout.

    xt_ref : (IN, TB)   streamed batch tile (batch on the lane axis)
    w1_ref : (H, IN)    resident, PyTorch (out, in) layout
    b1_ref : (H, 1)     resident, f32
    w2_ref : (A, H)     resident, PyTorch (out, in) layout
    b2_ref : (A, 1)     resident, f32
    out_ref: (A, TB)    lane-dense logits tile (transposed)
    """
    # Upcast to f32 for the VPU path (v5e has no bf16 VALU/EUP).
    xt = xt_ref[...].astype(jnp.float32)        # (IN, TB)
    w1 = w1_ref[...].astype(jnp.float32)        # (H, IN)

    # Layer 1: K=4 contraction as 4 rank-1 VPU FMAs (skip the MXU).
    h = b1_ref[...]                             # (H, 1) -> broadcasts to (H, TB)
    for k in range(IN_FEATURES):
        h = h + w1[:, k:k + 1] * xt[k:k + 1, :]
    h = jnp.maximum(h, 0.0)                     # ReLU, f32 on the VPU

    # Layer 2: real K=128 contraction on the MXU, f32 accumulation.
    o = jnp.dot(w2_ref[...], h.astype(w2_ref.dtype),
                preferred_element_type=jnp.float32)   # (A, TB)
    o = o + b2_ref[...]                         # (A, TB) + (A, 1)
    out_ref[...] = o.astype(out_ref.dtype)


def mlp_forward(x, w1, b1, w2, b2, *, block_b=1024, compute_dtype=jnp.float32):
    """Fused two-layer MLP forward pass.

    x  : (B, 4)   float32
    w1 : (128, 4) float32   PyTorch nn.Linear(4, 128) weight (out, in)
    b1 : (128,)   float32
    w2 : (A, 128) float32   PyTorch nn.Linear(128, A) weight (out, in)
    b2 : (A,)     float32
    returns (B, A) float32 logits
    """
    B = x.shape[0]
    H, IN = w1.shape
    A = w2.shape[0]

    # Batch tile = lane dim of the transposed layout: multiple of 128,
    # capped at block_b, and no larger than needed for tiny B.
    tb = min(_round_up(block_b, _LANE), _round_up(max(B, 1), _LANE))
    Bp = _round_up(B, tb)

    # Transposed, zero-padded, (optionally bf16) streamed operand.
    xt = jnp.pad(x.T, ((0, 0), (0, Bp - B))).astype(compute_dtype)  # (IN, Bp)
    w1c = w1.astype(compute_dtype)
    w2c = w2.astype(compute_dtype)
    b1c = b1.reshape(H, 1).astype(jnp.float32)
    b2c = b2.reshape(A, 1).astype(jnp.float32)

    grid = (Bp // tb,)
    out_t = pl.pallas_call(
        _mlp_kernel,
        out_shape=jax.ShapeDtypeStruct((A, Bp), jnp.float32),
        grid_spec=pltpu.PrefetchScalarGridSpec(
            num_scalar_prefetch=0,
            grid=grid,
            in_specs=[
                pl.BlockSpec((IN, tb), lambda i: (0, i)),   # x tile (streamed)
                pl.BlockSpec((H, IN), lambda i: (0, 0)),    # w1 (resident)
                pl.BlockSpec((H, 1), lambda i: (0, 0)),     # b1 (resident)
                pl.BlockSpec((A, H), lambda i: (0, 0)),     # w2 (resident)
                pl.BlockSpec((A, 1), lambda i: (0, 0)),     # b2 (resident)
            ],
            out_specs=pl.BlockSpec((A, tb), lambda i: (0, i)),
        ),
        compiler_params=pltpu.CompilerParams(
            dimension_semantics=("parallel",)),  # v7x: shard batch over 2 TCs
    )(xt, w1c, b1c, w2c, b2c)

    # Drop batch padding and transpose back to the PyTorch (B, A) convention.
    return out_t[:, :B].T


def forward(x, params, state=None, compute_dtype=jnp.float32):
    """Mirrors MLPModel.forward(x, state, device) -> (logits, None)."""
    logits = mlp_forward(x, params["w1"], params["b1"], params["w2"],
                         params["b2"], compute_dtype=compute_dtype)
    return logits, None


def init_state():
    """Mirrors MLPModel.init_state(device) -> None."""
    return None


def init_params(key):
    """Deterministic parameter init with native PyTorch (out, in) layouts."""
    k1, k2, k3, k4 = jax.random.split(key, 4)
    w1 = jax.random.uniform(k1, (HIDDEN, IN_FEATURES), jnp.float32,
                            minval=-0.5, maxval=0.5)
    b1 = jax.random.uniform(k2, (HIDDEN,), jnp.float32, minval=-0.5, maxval=0.5)
    w2 = jax.random.uniform(k3, (NUM_ACTIONS, HIDDEN), jnp.float32,
                            minval=-0.1, maxval=0.1)
    b2 = jax.random.uniform(k4, (NUM_ACTIONS,), jnp.float32,
                            minval=-0.1, maxval=0.1)
    return {"w1": w1, "b1": b1, "w2": w2, "b2": b2}


def _reference(x, p):
    h = jnp.maximum(x @ p["w1"].T + p["b1"], 0.0)
    return h @ p["w2"].T + p["b2"]


if __name__ == "__main__":
    key = jax.random.PRNGKey(0)
    kp, kx1, kx2 = jax.random.split(key, 3)
    params = init_params(kp)

    # --- Tiny RL-style batch (CartPole observations), f32 path -------------
    # TODO(synk): at B=8 launch overhead dominates; in a real RL loop this MLP
    # should be fused into the surrounding JAX step or batched across envs.
    B_small = 8
    x_small = jax.random.normal(kx1, (B_small, IN_FEATURES), jnp.float32)
    logits, state = forward(x_small, params)
    logits = jax.block_until_ready(logits)
    ref = _reference(x_small, params)
    assert logits.shape == (B_small, NUM_ACTIONS)
    assert state is None
    assert jnp.allclose(logits, ref, atol=1e-5, rtol=1e-5), "f32 small-B mismatch"

    # --- Larger batch exercising the grid + padding (1000 -> 4 x 256) ------
    B_big = 1000
    x_big = jax.random.normal(kx2, (B_big, IN_FEATURES), jnp.float32)
    logits_big = mlp_forward(x_big, params["w1"], params["b1"],
                             params["w2"], params["b2"], block_b=256)
    logits_big = jax.block_until_ready(logits_big)
    ref_big = _reference(x_big, params)
    assert logits_big.shape == (B_big, NUM_ACTIONS)
    assert jnp.allclose(logits_big, ref_big, atol=1e-5, rtol=1e-5), \
        "f32 tiled mismatch"

    # --- bf16-streamed path (v6e/v7x HBM optimization), f32 accumulation ---
    logits_bf16 = mlp_forward(x_big, params["w1"], params["b1"],
                              params["w2"], params["b2"], block_b=256,
                              compute_dtype=jnp.bfloat16)
    logits_bf16 = jax.block_until_ready(logits_bf16)
    assert jnp.allclose(logits_bf16, ref_big, atol=5e-2, rtol=5e-2), \
        "bf16 path mismatch"

    print("KERNEL_OK")
</pallas_src>

<mosaic_0001>
module attributes {stable_mosaic.version = 11 : i64} {
  func.func @_mlp_kernel(%arg0: i32, %arg1: memref<4x128xf32, #tpu.memory_space<vmem>>, %arg2: memref<128x4xf32, #tpu.memory_space<vmem>>, %arg3: memref<128x1xf32, #tpu.memory_space<vmem>>, %arg4: memref<2x128xf32, #tpu.memory_space<vmem>>, %arg5: memref<2x1xf32, #tpu.memory_space<vmem>>, %arg6: memref<2x128xf32, #tpu.memory_space<vmem>>) attributes {dimension_semantics = [#tpu.dimension_semantics<parallel>], iteration_bounds = array<i64: 1>, scalar_prefetch = 0 : i64, scratch_operands = 0 : i64, tpu.core_type = #tpu.core_type<tc>, window_params = [{transform_indices = @transform_0, window_bounds = array<i64: 4, 128>}, {pipeline_mode = #tpu.pipeline_mode<synchronous>, transform_indices = @transform_1, window_bounds = array<i64: 128, 4>}, {pipeline_mode = #tpu.pipeline_mode<synchronous>, transform_indices = @transform_2, window_bounds = array<i64: 128, 1>}, {pipeline_mode = #tpu.pipeline_mode<synchronous>, transform_indices = @transform_3, window_bounds = array<i64: 2, 128>}, {pipeline_mode = #tpu.pipeline_mode<synchronous>, transform_indices = @transform_4, window_bounds = array<i64: 2, 1>}, {transform_indices = @transform_5, window_bounds = array<i64: 2, 128>}]} {
    %c0 = arith.constant 0 : index
    %c0_0 = arith.constant 0 : index
    %0 = vector.load %arg1[%c0, %c0_0] : memref<4x128xf32, #tpu.memory_space<vmem>>, vector<4x128xf32>
    %c0_1 = arith.constant 0 : index
    %c0_2 = arith.constant 0 : index
    %1 = vector.load %arg2[%c0_1, %c0_2] : memref<128x4xf32, #tpu.memory_space<vmem>>, vector<128x4xf32>
    %c0_3 = arith.constant 0 : index
    %c0_4 = arith.constant 0 : index
    %2 = vector.load %arg3[%c0_3, %c0_4] : memref<128x1xf32, #tpu.memory_space<vmem>>, vector<128x1xf32>
    %3 = vector.extract_strided_slice %1 {offsets = [0, 0], sizes = [128, 1], strides = [1, 1]} : vector<128x4xf32> to vector<128x1xf32>
    %4 = vector.extract_strided_slice %0 {offsets = [0, 0], sizes = [1, 128], strides = [1, 1]} : vector<4x128xf32> to vector<1x128xf32>
    %5 = vector.broadcast %3 : vector<128x1xf32> to vector<128x128xf32>
    %6 = vector.broadcast %4 : vector<1x128xf32> to vector<128x128xf32>
    %7 = arith.mulf %5, %6 : vector<128x128xf32>
    %8 = vector.broadcast %2 : vector<128x1xf32> to vector<128x128xf32>
    %9 = arith.addf %8, %7 : vector<128x128xf32>
    %10 = vector.extract_strided_slice %1 {offsets = [0, 1], sizes = [128, 1], strides = [1, 1]} : vector<128x4xf32> to vector<128x1xf32>
    %11 = vector.extract_strided_slice %0 {offsets = [1, 0], sizes = [1, 128], strides = [1, 1]} : vector<4x128xf32> to vector<1x128xf32>
    %12 = vector.broadcast %10 : vector<128x1xf32> to vector<128x128xf32>
    %13 = vector.broadcast %11 : vector<1x128xf32> to vector<128x128xf32>
    %14 = arith.mulf %12, %13 : vector<128x128xf32>
    %15 = arith.addf %9, %14 : vector<128x128xf32>
    %16 = vector.extract_strided_slice %1 {offsets = [0, 2], sizes = [128, 1], strides = [1, 1]} : vector<128x4xf32> to vector<128x1xf32>
    %17 = vector.extract_strided_slice %0 {offsets = [2, 0], sizes = [1, 128], strides = [1, 1]} : vector<4x128xf32> to vector<1x128xf32>
    %18 = vector.broadcast %16 : vector<128x1xf32> to vector<128x128xf32>
    %19 = vector.broadcast %17 : vector<1x128xf32> to vector<128x128xf32>
    %20 = arith.mulf %18, %19 : vector<128x128xf32>
    %21 = arith.addf %15, %20 : vector<128x128xf32>
    %22 = vector.extract_strided_slice %1 {offsets = [0, 3], sizes = [128, 1], strides = [1, 1]} : vector<128x4xf32> to vector<128x1xf32>
    %23 = vector.extract_strided_slice %0 {offsets = [3, 0], sizes = [1, 128], strides = [1, 1]} : vector<4x128xf32> to vector<1x128xf32>
    %24 = vector.broadcast %22 : vector<128x1xf32> to vector<128x128xf32>
    %25 = vector.broadcast %23 : vector<1x128xf32> to vector<128x128xf32>
    %26 = arith.mulf %24, %25 : vector<128x128xf32>
    %27 = arith.addf %21, %26 : vector<128x128xf32>
    %cst = arith.constant 0.000000e+00 : f32
    %28 = vector.broadcast %cst : f32 to vector<128x128xf32>
    %29 = arith.maximumf %27, %28 : vector<128x128xf32>
    %c0_5 = arith.constant 0 : index
    %c0_6 = arith.constant 0 : index
    %30 = vector.load %arg4[%c0_5, %c0_6] : memref<2x128xf32, #tpu.memory_space<vmem>>, vector<2x128xf32>
    %cst_7 = arith.constant dense<0.000000e+00> : vector<2x128xf32>
    %31 = tpu.matmul %30, %29, %cst_7 {dimension_numbers = #tpu.dot_dimension_numbers<[1], [0], [0], [1], [0, 0, 1, 1], [], []>} : vector<2x128xf32>, vector<128x128xf32>, vector<2x128xf32> -> vector<2x128xf32>
    %c0_8 = arith.constant 0 : index
    %c0_9 = arith.constant 0 : index
    %32 = vector.load %arg5[%c0_8, %c0_9] : memref<2x1xf32, #tpu.memory_space<vmem>>, vector<2x1xf32>
    %33 = vector.broadcast %32 : vector<2x1xf32> to vector<2x128xf32>
    %34 = arith.addf %31, %33 : vector<2x128xf32>
    %c0_10 = arith.constant 0 : index
    %c0_11 = arith.constant 0 : index
    %35 = vector.load %arg6[%c0_10, %c0_11] : memref<2x128xf32, #tpu.memory_space<vmem>>, vector<2x128xf32>
    tpu.vector_store %arg6[%c0_10, %c0_11], %34 {strides = array<i32>} : memref<2x128xf32, #tpu.memory_space<vmem>>, vector<2x128xf32>,
    return
  }
  func.func @transform_0(%arg0: i32) -> (i32, i32) {
    %c0_i32 = arith.constant 0 : i32
    %c0_i32_0 = arith.constant 0 : i32
    return %c0_i32, %arg0 : i32, i32
  }
  func.func @transform_1(%arg0: i32) -> (i32, i32) {
    %c0_i32 = arith.constant 0 : i32
    %c0_i32_0 = arith.constant 0 : i32
    %c0_i32_1 = arith.constant 0 : i32
    return %c0_i32, %c0_i32_0 : i32, i32
  }
  func.func @transform_2(%arg0: i32) -> (i32, i32) {
    %c0_i32 = arith.constant 0 : i32
    %c0_i32_0 = arith.constant 0 : i32
    %c0_i32_1 = arith.constant 0 : i32
    return %c0_i32, %c0_i32_0 : i32, i32
  }
  func.func @transform_3(%arg0: i32) -> (i32, i32) {
    %c0_i32 = arith.constant 0 : i32
    %c0_i32_0 = arith.constant 0 : i32
    %c0_i32_1 = arith.constant 0 : i32
    return %c0_i32, %c0_i32_0 : i32, i32
  }
  func.func @transform_4(%arg0: i32) -> (i32, i32) {
    %c0_i32 = arith.constant 0 : i32
    %c0_i32_0 = arith.constant 0 : i32
    %c0_i32_1 = arith.constant 0 : i32
    return %c0_i32, %c0_i32_0 : i32, i32
  }
  func.func @transform_5(%arg0: i32) -> (i32, i32) {
    %c0_i32 = arith.constant 0 : i32
    %c0_i32_0 = arith.constant 0 : i32
    return %c0_i32, %arg0 : i32, i32
  }
}

</mosaic_0001>

<bundles_post_ra>
// kernel: tpu_custom_call.1
= control target key start
LH: loop header
LB: loop body
LE: loop exit
PB: predicated region body
PF: predicated region fallthrough
CT: control target
= control target key end

     0   :  { %v810_v2 = vmov 2   ;;  %v811_v3 = vmov 0   ;;  %s1245_s0 = inlined_call_operand.vmem [shape: f32[4,128], index: 0, kind: input, shape index: {}]   ;;  %s1246_s1 = inlined_call_operand.vmem [shape: f32[128,4], index: 1, kind: input, shape index: {}]   ;;  %s1247_s2 = inlined_call_operand.vmem [shape: f32[128,1], index: 2, kind: input, shape index: {}]   ;;  %s1248_s3 = inlined_call_operand.vmem [shape: f32[2,128], index: 3, kind: input, shape index: {}]   ;;  %s1249_s4 = inlined_call_operand.vmem [shape: f32[2,1], index: 4, kind: input, shape index: {}]   ;;  %s1250_s5 = inlined_call_operand.hbm [shape: f32[2,128], index: 5, kind: output, shape index: {}]  }
   0x1   :  { %v38_v0 = vld [vmem:[%s1247_s2] sm:$0xff]  ;;  %v854_v1 = vld [vmem:[%s1246_s1 + $0x10] sm:$0xff]  ;;  %750 = vset.pattern.permute.xlu0 %v810_v2  ;;  %742 = vset.pattern.permute.xlu1 %v811_v3  ;;  %v39_v4 = vld [vmem:[%s1247_s2 + $0x8] sm:$0xff] }
   0x2   :  { %156 = vperm.xlu1 %742, %v38_v0   ;;  %359 = vperm.xlu0 %750, %v854_v1   ;;  %v865_v5 = vld [vmem:[%s1246_s1 + $0x30] sm:$0xff]  ;;  %v876_v7 = vld [vmem:[%s1246_s1 + $0x8] sm:$0xff] }
   0x3   :  { %v871_v6 = vld [vmem:[%s1246_s1 + $0x50] sm:$0xff] }
   0x6   :  { %161 = vperm.xlu1 %742, %v39_v4   ;;  %375 = vperm.xlu0 %750, %v865_v5  }
   0x7   :  { %10 = vsyncpa [#allocation3], 0  ;;  %v812_v8 = vmov 1   ;;  %v22_v9 = vld [vmem:[%s1246_s1] sm:$0xff]  ;;  %v25_v10 = vld [vmem:[%s1246_s1 + $0x18] sm:$0xff]  ;;  %v813_v16 = vmov 3   ;;  %v134_v0 = vlaneseq }
   0x8   :  { %v40_v11 = vld [vmem:[%s1247_s2 + $0x10] sm:$0xff]  ;;  %v41_v12 = vld [vmem:[%s1247_s2 + $0x18] sm:$0xff]  ;;  %v43_v13 = vld [vmem:[%s1247_s2 + $0x28] sm:$0xff]  ;;  %v814_v28 = vmov 0.0|0.0   ;;  %vm815_vm0 = vmmov 0   ;;  %s817_s9 = smov [#allocation2]  }
   0x9   :  { %v906_v14 = vld [vmem:[%s1246_s1 + $0x38] sm:$0xff]  ;;  %v44_v15 = vld [vmem:[%s1247_s2 + $0x30] sm:$0xff]  ;;  %v47_v17 = vld [vmem:[%s1247_s2 + $0x48] sm:$0xff]  ;;  %710 = vmatprep.subr.bf16.mxu0 %v814_v28  ;;  %s650_s10 = sshll.u32 %s817_s9, 4  ;;  %s651_s10 = int_to_ptr.vmem [resolvable:$true] %s650_s10 }
   0xa   :  { %743 = vset.pattern.permute.xlu1 %v812_v8  ;;  %391 = vperm.xlu0 %750, %v871_v6   ;;  %v26_v18 = vld [vmem:[%s1246_s1 + $0x20] sm:$0xff]  ;;  %v924_v19 = vld [vmem:[%s1246_s1 + $0x58] sm:$0xff]  ;;  %v27_v20 = vld [vmem:[%s1246_s1 + $0x28] sm:$0xff]  ;;  %s786_s11 = scalar_lea.vmem %s651_s10, 32  ;;  %p791_p1 = scmp.lt.s32.totalorder %s651_s10, %s651_s10 }
   0xb   :  { %255 = vperm.xlu1 %743, %v876_v7   ;;  %v48_v21 = vld [vmem:[%s1247_s2 + $0x50] sm:$0xff]  ;;  %v51_v22 = vld [vmem:[%s1247_s2 + $0x68] sm:$0xff]  ;;  %v940_v23 = vld [vmem:[%s1246_s1 + $0x78] sm:$0xff]  ;;  %p787_p0 = scmp.ne.s32.totalorder %s651_s10, %s786_s11  ;;  %p792_p2 = scmp.lt.s32.totalorder %s786_s11, %s786_s11 }
   0xc   :  { %v42_v24 = vld [vmem:[%s1247_s2 + $0x20] sm:$0xff]  ;;  %v52_v25 = vld [vmem:[%s1247_s2 + $0x70] sm:$0xff]  ;;  %v45_v27 = vld [vmem:[%s1247_s2 + $0x38] sm:$0xff] }
   0xd   :  { %v961_v26 = vld [vmem:[%s1246_s1 + $0x70] sm:$0xff]  ;;  %v30_v29 = vld [vmem:[%s1246_s1 + $0x40] sm:$0xff]  ;;  %v31_v30 = vld [vmem:[%s1246_s1 + $0x48] sm:$0xff]  ;;  %p793_p3 = por %p792_p2, %p791_p1 }
   0xe   :  { %771 = vset.pattern.permute.xlu0 %v811_v3  ;;  %v988_v31 = vld [vmem:[%s1246_s1 + $0x68] sm:$0xff]  ;;  %v46_v32 = vld [vmem:[%s1247_s2 + $0x40] sm:$0xff]  ;;  %v49_v44 = vld [vmem:[%s1247_s2 + $0x58] sm:$0xff] }
   0xf   :  { %744 = vset.pattern.permute.xlu1 %v811_v3  ;;  %56 = vperm.xlu0 %771, %v22_v9   ;;  %v1047_v52 = vld [vmem:[%s1246_s1 + $0x60] sm:$0xff]  ;;  %p794_p4 = pnand %p793_p3, %p787_p0 }
  0x10   :  { %66 = vperm.xlu1 %744, %v854_v1   ;;  %v50_v59 = vld [vmem:[%s1247_s2 + $0x60] sm:$0xff] }
  0x13   :  { %61 = vperm.xlu0 %771, %v876_v7  }
  0x14   :  { %745 = vset.pattern.permute.xlu1 %v810_v2 }
  0x15   :  { %351 = vperm.xlu1 %745, %v22_v9  }
  0x17   :  { %71 = vperm.xlu0 %771, %v25_v10  }
  0x19   :  { %355 = vperm.xlu1 %745, %v876_v7  }
  0x1b   :  { %166 = vperm.xlu0 %771, %v40_v11  }
  0x1d   :  { %746 = vset.pattern.permute.xlu1 %v811_v3 }
  0x1e   :  { %171 = vperm.xlu1 %746, %v41_v12  }
  0x1f   :  { %181 = vperm.xlu0 %771, %v43_v13  }
  0x22   :  { %747 = vset.pattern.permute.xlu1 %v812_v8 }
  0x23   :  { %91 = vperm.xlu0 %771, %v906_v14   ;;  %263 = vperm.xlu1 %747, %v25_v10  }
  0x27   :  { %186 = vperm.xlu0 %771, %v44_v15   ;;  %748 = vset.pattern.permute.xlu1 %v813_v16 }
  0x28   :  { %451 = vperm.xlu1 %748, %v22_v9  }
  0x2b   :  { %201 = vperm.xlu0 %771, %v47_v17  }
  0x2c   :  { %749 = vset.pattern.permute.xlu1 %v811_v3 }
  0x2d   :  { %76 = vperm.xlu1 %749, %v26_v18  }
  0x2f   :  { %111 = vperm.xlu0 %771, %v924_v19  }
  0x31   :  { %81 = vperm.xlu1 %749, %v27_v20  }
  0x33   :  { %206 = vperm.xlu0 %771, %v48_v21  }
  0x35   :  { %751 = vset.pattern.permute.xlu1 %v810_v2 }
  0x36   :  { %363 = vperm.xlu1 %751, %v25_v10  }
  0x37   :  { %221 = vperm.xlu0 %771, %v51_v22  }
  0x3a   :  { %752 = vset.pattern.permute.xlu1 %v811_v3 }
  0x3b   :  { %131 = vperm.xlu0 %771, %v940_v23   ;;  %176 = vperm.xlu1 %752, %v42_v24  }
  0x3f   :  { %226 = vperm.xlu0 %771, %v52_v25   ;;  %753 = vset.pattern.permute.xlu1 %v812_v8 }
  0x40   :  { %267 = vperm.xlu1 %753, %v26_v18  }
  0x43   :  { %778 = vset.pattern.permute.xlu0 %v812_v8 }
  0x44   :  { %251 = vperm.xlu0 %778, %v22_v9   ;;  %271 = vperm.xlu1 %753, %v27_v20  }
  0x48   :  { %259 = vperm.xlu0 %778, %v854_v1   ;;  %754 = vset.pattern.permute.xlu1 %v813_v16 }
  0x49   :  { %463 = vperm.xlu1 %754, %v25_v10   ;;  %v21_v10 = vld [vmem:[%s1245_s0] sm:$0xf] }
  0x4c   :  { %275 = vperm.xlu0 %778, %v865_v5  }
  0x4d   :  { %755 = vset.pattern.permute.xlu1 %v811_v3 }
  0x4e   :  { %86 = vperm.xlu1 %755, %v865_v5  }
  0x50   :  { %291 = vperm.xlu0 %778, %v871_v6  }
  0x52   :  { %756 = vset.pattern.permute.xlu1 %v810_v2 }
  0x53   :  { %367 = vperm.xlu1 %756, %v26_v18  }
  0x54   :  { %307 = vperm.xlu0 %778, %v961_v26  }
  0x57   :  { %371 = vperm.xlu1 %756, %v27_v20  }
  0x58   :  { %780 = vset.pattern.permute.xlu0 %v813_v16 }
  0x59   :  { %455 = vperm.xlu0 %780, %v876_v7  }
  0x5b   :  { %757 = vset.pattern.permute.xlu1 %v811_v3 }
  0x5c   :  { %191 = vperm.xlu1 %757, %v45_v27  }
  0x5d   :  { %459 = vperm.xlu0 %780, %v854_v1  }
  0x60   :  { %758 = vset.pattern.permute.xlu1 %v812_v8 }
  0x61   :  { %471 = vperm.xlu0 %780, %v27_v20   ;;  %279 = vperm.xlu1 %758, %v906_v14  }
  0x65   :  { %475 = vperm.xlu0 %780, %v865_v5   ;;  %759 = vset.pattern.permute.xlu1 %v813_v16  ;;  %v135_v5 = vshrl.u32 %v134_v0, 7 }
  0x66   :  { %467 = vperm.xlu1 %759, %v26_v18  }
  0x67   :  { %v316_v11 = vsub.s32 1, %v135_v5  ;;  %v416_v15 = vsub.s32 2, %v135_v5 }
  0x69   :  { %487 = vperm.xlu0 %780, %v31_v30   ;;  %v1094_v17 = vrot.slane %v21_v10, %v316_v11  ;;  %v1098_v22 = vrot.slane %v21_v10, %v416_v15 }
  0x6a   :  { %760 = vset.pattern.permute.xlu1 %v811_v3 }
  0x6b   :  { %96 = vperm.xlu1 %760, %v30_v29  }
  0x6d   :  { %491 = vperm.xlu0 %780, %v871_v6  }
  0x6f   :  { %101 = vperm.xlu1 %760, %v31_v30  }
  0x71   :  { %503 = vperm.xlu0 %780, %v988_v31  }
  0x73   :  { %761 = vset.pattern.permute.xlu1 %v810_v2 }
  0x74   :  { %379 = vperm.xlu1 %761, %v906_v14  }
  0x75   :  { %507 = vperm.xlu0 %780, %v961_v26  }
  0x78   :  { %762 = vset.pattern.permute.xlu1 %v811_v3 }
  0x79   :  { %196 = vperm.xlu1 %762, %v46_v32   ;;  %785 = vset.pattern.permute.xlu0 %v811_v3 }
  0x7d   :  { %763 = vset.pattern.permute.xlu1 %v812_v8 }
  0x7e   :  { %283 = vperm.xlu1 %763, %v30_v29  }
  0x81   :  { %v1000_v33 = vpop.permute.xlu1 %156  ;;  %v1002_v34 = vpop.permute.xlu0 %359 }
  0x82   :  { %287 = vperm.xlu1 %763, %v31_v30  }
  0x85   :  { %v1004_v35 = vpop.permute.xlu1 %161  ;;  %v1006_v36 = vpop.permute.xlu0 %375 }
  0x86   :  { %764 = vset.pattern.permute.xlu1 %v813_v16 }
  0x87   :  { %479 = vperm.xlu1 %764, %v906_v14  }
  0x89   :  { %v1010_v37 = vpop.permute.xlu0 %391 }
  0x8a   :  { %v1012_v38 = vpop.permute.xlu1 %255 }
  0x8b   :  { %765 = vset.pattern.permute.xlu1 %v811_v3 }
  0x8c   :  { %106 = vperm.xlu1 %765, %v871_v6   ;;  %v136_v6 = vsub.s32 0, %v135_v5 }
  0x8e   :  { %v57_v39 = vpop.permute.xlu0 %56  ;;  %v1090_v12 = vrot.slane %v21_v10, %v136_v6 }
  0x8f   :  { %v1016_v40 = vpop.permute.xlu1 %66 }
  0x90   :  { %766 = vset.pattern.permute.xlu1 %v810_v2  ;;  %v138_v18 = vmul.f32 %v1090_v12, %v57_v39  ;;  %v424_v39 = vmul.f32 %v1098_v22, %v1006_v36  ;;  %v319_v36 = vmul.f32 %v1094_v17, %v1012_v38 }
  0x91   :  { %383 = vperm.xlu1 %766, %v30_v29  }
  0x92   :  { %v1019_v41 = vpop.permute.xlu0 %61  ;;  %v234_v27 = vadd.f32 %v1000_v33, %v138_v18 }
  0x94   :  { %v1021_v42 = vpop.permute.xlu1 %351 }
  0x95   :  { %387 = vperm.xlu1 %766, %v31_v30   ;;  %v516_v30 = vsub.s32 3, %v135_v5 }
  0x96   :  { %v1023_v43 = vpop.permute.xlu0 %71 }
  0x97   :  { %v141_v0 = vmul.f32 %v1090_v12, %v1023_v43  ;;  %v1116_v5 = vrot.slane %v21_v10, %v516_v30 }
  0x98   :  { %v1028_v45 = vpop.permute.xlu1 %355 }
  0x99   :  { %767 = vset.pattern.permute.xlu1 %v811_v3 }
  0x9a   :  { %v1031_v46 = vpop.permute.xlu0 %166  ;;  %211 = vperm.xlu1 %767, %v49_v44  }
  0x9d   :  { %v1033_v47 = vpop.permute.xlu1 %171 }
  0x9e   :  { %768 = vset.pattern.permute.xlu1 %v812_v8  ;;  %v1036_v48 = vpop.permute.xlu0 %181  ;;  %v237_v38 = vadd.f32 %v1033_v47, %v141_v0 }
  0x9f   :  { %295 = vperm.xlu1 %768, %v924_v19  }
  0xa2   :  { %v1039_v49 = vpop.permute.xlu1 %263  ;;  %v1041_v50 = vpop.permute.xlu0 %91 }
  0xa3   :  { %769 = vset.pattern.permute.xlu1 %v813_v16 }
  0xa4   :  { %483 = vperm.xlu1 %769, %v30_v29   ;;  %v139_v29 = vmul.f32 %v1090_v12, %v1019_v41  ;;  %v418_v41 = vmul.f32 %v1098_v22, %v1021_v42  ;;  %v419_v42 = vmul.f32 %v1098_v22, %v1028_v45  ;;  %v420_v45 = vmul.f32 %v1098_v22, %v1002_v34 }
  0xa6   :  { %v187_v51 = vpop.permute.xlu0 %186  ;;  %v235_v33 = vadd.f32 %v1004_v35, %v139_v29  ;;  %v140_v35 = vmul.f32 %v1090_v12, %v1016_v40 }
  0xa7   :  { %v1049_v53 = vpop.permute.xlu1 %451 }
  0xa8   :  { %770 = vset.pattern.permute.xlu1 %v811_v3  ;;  %v518_v40 = vmul.f32 %v1116_v5, %v1049_v53 }
  0xa9   :  { %116 = vperm.xlu1 %770, %v1047_v52  }
  0xaa   :  { %v1053_v54 = vpop.permute.xlu0 %201 }
  0xac   :  { %v1055_v55 = vpop.permute.xlu1 %76 }
  0xad   :  { %121 = vperm.xlu1 %770, %v988_v31  }
  0xae   :  { %v1058_v56 = vpop.permute.xlu0 %111 }
  0xb0   :  { %v1060_v57 = vpop.permute.xlu1 %81 }
  0xb1   :  { %772 = vset.pattern.permute.xlu1 %v810_v2 }
  0xb2   :  { %395 = vperm.xlu1 %772, %v924_v19   ;;  %v1064_v58 = vpop.permute.xlu0 %206 }
  0xb5   :  { %v364_v60 = vpop.permute.xlu1 %363 }
  0xb6   :  { %773 = vset.pattern.permute.xlu1 %v811_v3  ;;  %v1070_v61 = vpop.permute.xlu0 %221  ;;  %v421_v18 = vmul.f32 %v1098_v22, %v364_v60 }
  0xb7   :  { %216 = vperm.xlu1 %773, %v50_v59  }
  0xba   :  { %v1072_v62 = vpop.permute.xlu1 %176  ;;  %v1074_v63 = vpop.permute.xlu0 %131 }
  0xbb   :  { %774 = vset.pattern.permute.xlu1 %v812_v8 }
  0xbc   :  { %299 = vperm.xlu1 %774, %v1047_v52  }
  0xbe   :  { %v1078_v1 = vpop.permute.xlu0 %226 }
  0xbf   :  { %v1080_v4 = vpop.permute.xlu1 %267 }
  0xc0   :  { %303 = vperm.xlu1 %774, %v988_v31  }
  0xc3   :  { %v252_v7 = vpop.permute.xlu0 %251  ;;  %v1083_v9 = vpop.permute.xlu1 %271 }
  0xc4   :  { %775 = vset.pattern.permute.xlu1 %v813_v16  ;;  %v323_v0 = vmul.f32 %v1094_v17, %v1083_v9 }
  0xc5   :  { %495 = vperm.xlu1 %775, %v924_v19   ;;  %v318_v19 = vmul.f32 %v1094_v17, %v252_v7 }
  0xc7   :  { %v260_v13 = vpop.permute.xlu0 %259  ;;  %v334_v59 = vadd.f32 %v318_v19, %v234_v27  ;;  %v236_v19 = vadd.f32 %v1031_v46, %v140_v35 }
  0xc8   :  { %v464_v14 = vpop.permute.xlu1 %463  ;;  %v320_v15 = vmul.f32 %v1094_v17, %v260_v13 }
  0xc9   :  { %776 = vset.pattern.permute.xlu1 %v811_v3  ;;  %v434_v10 = vadd.f32 %v418_v41, %v334_v59 }
  0xca   :  { %126 = vperm.xlu1 %776, %v961_v26  }
  0xcb   :  { %v276_v20 = vpop.permute.xlu0 %275  ;;  %v534_v27 = vadd.f32 %v518_v40, %v434_v10 }
  0xcc   :  { %v324_v24 = vmul.f32 %v1094_v17, %v276_v20  ;;  %v335_v20 = vadd.f32 %v319_v36, %v235_v33 }
  0xcd   :  { %v87_v21 = vpop.permute.xlu1 %86  ;;  %v550_v59 = vmax.f32 %v534_v27, 0.0 }
  0xce   :  { %v144_v25 = vmul.f32 %v1090_v12, %v87_v21  ;;  %777 = vset.pattern.permute.xlu1 %v810_v2  ;;  %v521_v21 = vmul.f32 %v1116_v5, %v464_v14  ;;  %v435_v47 = vadd.f32 %v419_v42, %v335_v20 }
  0xcf   :  { %399 = vperm.xlu1 %777, %v1047_v52   ;;  %v1107_v32 = vpop.permute.xlu0 %291 }
  0xd0   :  { %v240_v44 = vadd.f32 %v187_v51, %v144_v25  ;;  %v321_v51 = vmul.f32 %v1094_v17, %v1039_v49  ;;  %v336_v25 = vadd.f32 %v320_v15, %v236_v19 }
  0xd2   :  { %v340_v6 = vadd.f32 %v324_v24, %v240_v44  ;;  %v368_v7 = vpop.permute.xlu1 %367  ;;  %v337_v13 = vadd.f32 %v321_v51, %v237_v38  ;;  %v436_v14 = vadd.f32 %v420_v45, %v336_v25  ;;  %v145_v25 = vmul.f32 %v1090_v12, %v1041_v50 }
  0xd3   :  { %403 = vperm.xlu1 %777, %v988_v31   ;;  %v1119_v11 = vpop.permute.xlu0 %307  ;;  %v53_v31 = vld [vmem:[%s1247_s2 + $0x78] sm:$0xff] }
  0xd4   :  { %v1125_v43 = vadd.f32 %v424_v39, %v340_v6  ;;  %v437_v29 = vadd.f32 %v421_v18, %v337_v13  ;;  %v142_v6 = vmul.f32 %v1090_v12, %v1055_v55  ;;  %v422_v55 = vmul.f32 %v1098_v22, %v368_v7 }
  0xd6   :  { %v372_v49 = vpop.permute.xlu1 %371  ;;  %v537_v53 = vadd.f32 %v521_v21, %v437_v29  ;;  %v238_v42 = vadd.f32 %v1072_v62, %v142_v6  ;;  %v328_v6 = vmul.f32 %v1094_v17, %v1107_v32 }
  0xd7   :  { %779 = vset.pattern.permute.xlu1 %v811_v3  ;;  %v143_v3 = vmul.f32 %v1090_v12, %v1060_v57  ;;  %v423_v36 = vmul.f32 %v1098_v22, %v372_v49 }
  0xd8   :  { %v456_v24 = vpop.permute.xlu0 %455  ;;  %231 = vperm.xlu1 %779, %v53_v31   ;;  %v553_v10 = vmax.f32 %v537_v53, 0.0 }
  0xd9   :  { %v519_v60 = vmul.f32 %v1116_v5, %v456_v24  ;;  %v239_v57 = vadd.f32 %v1036_v48, %v143_v3  ;;  %v816_v24 = vmov 0.0  }
  0xda   :  { %707 = vmatprep.mubr.msk.f32.mxu0 %vm815_vm0, %v816_v24 }
  0xdb   :  { %v535_v46 = vadd.f32 %v519_v60, %v435_v47  ;;  %v1145_v30 = vpop.permute.xlu1 %191  ;;  %v339_v9 = vadd.f32 %v323_v0, %v239_v57  ;;  %v428_v57 = vmul.f32 %v1098_v22, %v1010_v37 }
  0xdc   :  { %v460_v39 = vpop.permute.xlu0 %459  ;;  %781 = vset.pattern.permute.xlu1 %v812_v8  ;;  %v322_v8 = vmul.f32 %v1094_v17, %v1080_v4 }
  0xdd   :  { %v551_v34 = vmax.f32 %v535_v46, 0.0  ;;  %v520_v44 = vmul.f32 %v1116_v5, %v460_v39  ;;  %311 = vperm.xlu1 %781, %v940_v23   ;;  %v439_v38 = vadd.f32 %v423_v36, %v339_v9 }
  0xde   :  { %v338_v4 = vadd.f32 %v322_v8, %v238_v42 }
  0xdf   :  { %v536_v33 = vadd.f32 %v520_v44, %v436_v14  ;;  %v711_v41 = vpack.c.bf16 %v551_v34, %v550_v59 }
  0xe0   :  { %v472_v51 = vpop.permute.xlu0 %471  ;;  %v280_v35 = vpop.permute.xlu1 %279  ;;  %v438_v62 = vadd.f32 %v422_v55, %v338_v4 }
  0xe1   :  { %v552_v15 = vmax.f32 %v536_v33, 0.0  ;;  %782 = vset.pattern.permute.xlu1 %v813_v16  ;;  %712 = vmatpush3.bf16.msra.mxu0 %v711_v41  ;;  %v523_v31 = vmul.f32 %v1116_v5, %v472_v51 }
  0xe2   :  { %499 = vperm.xlu1 %782, %v1047_v52   ;;  %713 = vmatprep.subr.bf16.mxu0 %v814_v28 }
  0xe3   :  { %v714_v48 = vpack.c.bf16 %v553_v10, %v552_v15  ;;  %v539_v49 = vadd.f32 %v523_v31, %v439_v38 }
  0xe4   :  { %v476_v60 = vpop.permute.xlu0 %475 }
  0xe5   :  { %v468_v18 = vpop.permute.xlu1 %467  ;;  %715 = vmatpush3.bf16.msra.mxu0 %v714_v48  ;;  %v555_v19 = vmax.f32 %v539_v49, 0.0  ;;  %v524_v29 = vmul.f32 %v1116_v5, %v476_v60 }
  0xe6   :  { %v522_v20 = vmul.f32 %v1116_v5, %v468_v18  ;;  %783 = vset.pattern.permute.xlu1 %v810_v2  ;;  %716 = vmatprep.subr.bf16.mxu0 %v814_v28 }
  0xe7   :  { %407 = vperm.xlu1 %783, %v961_v26   ;;  %v567_v26 = vld [vmem:[%s1249_s4] sm:$0x3]  ;;  %v540_v39 = vadd.f32 %v524_v29, %v1125_v43 }
  0xe8   :  { %v538_v7 = vadd.f32 %v522_v20, %v438_v62  ;;  %570 = vperm.xlu0 %785, %v567_v26   ;;  %v488_v31 = vpop.permute.xlu0 %487 }
  0xe9   :  { %v556_v59 = vmax.f32 %v540_v39, 0.0  ;;  %v527_v4 = vmul.f32 %v1116_v5, %v488_v31 }
  0xea   :  { %v554_v52 = vmax.f32 %v538_v7, 0.0  ;;  %v97_v40 = vpop.permute.xlu1 %96 }
  0xeb   :  { %411 = vperm.xlu1 %783, %v940_v23  }
  0xec   :  { %v717_v45 = vpack.c.bf16 %v555_v19, %v554_v52 }
  0xee   :  { %v102_v13 = vpop.permute.xlu1 %101  ;;  %718 = vmatpush3.bf16.msra.mxu0 %v717_v45 }
  0xef   :  { %784 = vset.pattern.permute.xlu1 %v813_v16  ;;  %719 = vmatprep.subr.bf16.mxu0 %v814_v28  ;;  %v325_v16 = vmul.f32 %v1094_v17, %v280_v35  ;;  %v147_v35 = vmul.f32 %v1090_v12, %v102_v13 }
  0xf0   :  { %511 = vperm.xlu1 %784, %v940_v23   ;;  %v241_v23 = vadd.f32 %v1145_v30, %v145_v25  ;;  %v149_v25 = vmul.f32 %v1090_v12, %v1058_v56 }
  0xf1   :  { %v243_v10 = vadd.f32 %v1053_v54, %v147_v35 }
  0xf2   :  { %v341_v3 = vadd.f32 %v325_v16, %v241_v23 }
  0xf3   :  { %v380_v2 = vpop.permute.xlu1 %379 }
  0xf4   :  { %v425_v46 = vmul.f32 %v1098_v22, %v380_v2 }
  0xf6   :  { %v441_v34 = vadd.f32 %v425_v46, %v341_v3 }
  0xf8   :  { %v197_v21 = vpop.permute.xlu1 %196 }
  0xfd   :  { %v284_v47 = vpop.permute.xlu1 %283 }
  0xfe   :  { %v326_v9 = vmul.f32 %v1094_v17, %v284_v47  ;;  %v492_v47 = vpop.permute.xlu0 %491 }
 0x101   :  { %v288_v27 = vpop.permute.xlu1 %287 }
 0x102   :  { %v327_v32 = vmul.f32 %v1094_v17, %v288_v27  ;;  %v528_v27 = vmul.f32 %v1116_v5, %v492_v47 }
 0x104   :  { %v343_v37 = vadd.f32 %v327_v32, %v243_v10 }
 0x106   :  { %v480_v53 = vpop.permute.xlu1 %479 }
 0x107   :  { %v525_v14 = vmul.f32 %v1116_v5, %v480_v53 }
 0x109   :  { %v541_v44 = vadd.f32 %v525_v14, %v441_v34 }
 0x10b   :  { %v557_v50 = vmax.f32 %v541_v44, 0.0  ;;  %v107_v0 = vpop.permute.xlu1 %106 }
 0x10c   :  { %v148_v30 = vmul.f32 %v1090_v12, %v107_v0 }
 0x10d   :  { %v720_v33 = vpack.c.bf16 %v557_v50, %v556_v59 }
 0x10e   :  { %v244_v41 = vadd.f32 %v1064_v58, %v148_v30  ;;  %v146_v58 = vmul.f32 %v1090_v12, %v97_v40 }
 0x10f   :  { %721 = vmatpush3.bf16.msra.mxu0 %v720_v33 }
 0x110   :  { %v344_v43 = vadd.f32 %v328_v6, %v244_v41  ;;  %v384_v8 = vpop.permute.xlu1 %383  ;;  %722 = vmatprep.subr.bf16.mxu0 %v814_v28  ;;  %v242_v48 = vadd.f32 %v197_v21, %v146_v58 }
 0x111   :  { %v426_v38 = vmul.f32 %v1098_v22, %v384_v8 }
 0x112   :  { %v444_v36 = vadd.f32 %v428_v57, %v344_v43  ;;  %v342_v62 = vadd.f32 %v326_v9, %v242_v48 }
 0x114   :  { %v388_v51 = vpop.permute.xlu1 %387  ;;  %v442_v20 = vadd.f32 %v426_v38, %v342_v62  ;;  %v544_v53 = vadd.f32 %v528_v27, %v444_v36 }
 0x115   :  { %v427_v15 = vmul.f32 %v1098_v22, %v388_v51 }
 0x116   :  { %v560_v44 = vmax.f32 %v544_v53, 0.0 }
 0x117   :  { %v443_v18 = vadd.f32 %v427_v15, %v343_v37 }
 0x119   :  { %v212_v42 = vpop.permute.xlu1 %211  ;;  %v543_v7 = vadd.f32 %v527_v4, %v443_v18 }
 0x11a   :  { %v245_v23 = vadd.f32 %v212_v42, %v149_v25  ;;  %v504_v42 = vpop.permute.xlu0 %503 }
 0x11b   :  { %v559_v52 = vmax.f32 %v543_v7, 0.0  ;;  %v531_v15 = vmul.f32 %v1116_v5, %v504_v42 }
 0x11e   :  { %v296_v55 = vpop.permute.xlu1 %295 }
 0x11f   :  { %v329_v60 = vmul.f32 %v1094_v17, %v296_v55 }
 0x121   :  { %v345_v46 = vadd.f32 %v329_v60, %v245_v23 }
 0x123   :  { %v484_v49 = vpop.permute.xlu1 %483 }
 0x124   :  { %v526_v54 = vmul.f32 %v1116_v5, %v484_v49 }
 0x126   :  { %v542_v19 = vadd.f32 %v526_v54, %v442_v20  ;;  %v332_v20 = vmul.f32 %v1094_v17, %v1119_v11 }
 0x128   :  { %v558_v40 = vmax.f32 %v542_v19, 0.0  ;;  %v117_v45 = vpop.permute.xlu1 %116  ;;  %v153_v19 = vmul.f32 %v1090_v12, %v1074_v63 }
 0x129   :  { %v150_v8 = vmul.f32 %v1090_v12, %v117_v45 }
 0x12a   :  { %v723_v13 = vpack.c.bf16 %v559_v52, %v558_v40 }
 0x12c   :  { %v122_v2 = vpop.permute.xlu1 %121  ;;  %724 = vmatpush3.bf16.msra.mxu0 %v723_v13  ;;  %v508_v13 = vpop.permute.xlu0 %507 }
 0x12d   :  { %725 = vmatprep.subr.bf16.mxu0 %v814_v28  ;;  %v151_v30 = vmul.f32 %v1090_v12, %v122_v2  ;;  %v532_v11 = vmul.f32 %v1116_v5, %v508_v13 }
 0x12f   :  { %v247_v57 = vadd.f32 %v1070_v61, %v151_v30 }
 0x131   :  { %v396_v21 = vpop.permute.xlu1 %395 }
 0x132   :  { %v429_v29 = vmul.f32 %v1098_v22, %v396_v21 }
 0x134   :  { %v445_v39 = vadd.f32 %v429_v29, %v345_v46 }
 0x136   :  { %v217_v24 = vpop.permute.xlu1 %216 }
 0x137   :  { %v246_v32 = vadd.f32 %v217_v24, %v150_v8 }
 0x13b   :  { %v300_v26 = vpop.permute.xlu1 %299 }
 0x13c   :  { %v330_v36 = vmul.f32 %v1094_v17, %v300_v26 }
 0x13e   :  { %v346_v9 = vadd.f32 %v330_v36, %v246_v32 }
 0x13f   :  { %v304_v16 = vpop.permute.xlu1 %303 }
 0x140   :  { %v331_v41 = vmul.f32 %v1094_v17, %v304_v16 }
 0x142   :  { %v347_v51 = vadd.f32 %v331_v41, %v247_v57 }
 0x144   :  { %v496_v3 = vpop.permute.xlu1 %495 }
 0x145   :  { %v529_v34 = vmul.f32 %v1116_v5, %v496_v3 }
 0x147   :  { %v545_v14 = vadd.f32 %v529_v34, %v445_v39 }
 0x149   :  { %v561_v59 = vmax.f32 %v545_v14, 0.0  ;;  %v127_v50 = vpop.permute.xlu1 %126 }
 0x14a   :  { %v152_v55 = vmul.f32 %v1090_v12, %v127_v50 }
 0x14b   :  { %v726_v0 = vpack.c.bf16 %v561_v59, %v560_v44 }
 0x14c   :  { %v248_v38 = vadd.f32 %v1078_v1, %v152_v55 }
 0x14d   :  { %727 = vmatpush3.bf16.msra.mxu0 %v726_v0 }
 0x14e   :  { %v400_v56 = vpop.permute.xlu1 %399  ;;  %728 = vmatprep.subr.bf16.mxu0 %v814_v28  ;;  %v348_v40 = vadd.f32 %v332_v20, %v248_v38 }
 0x14f   :  { %v430_v10 = vmul.f32 %v1098_v22, %v400_v56 }
 0x151   :  { %v446_v61 = vadd.f32 %v430_v10, %v346_v9 }
 0x152   :  { %v404_v6 = vpop.permute.xlu1 %403 }
 0x153   :  { %v431_v43 = vmul.f32 %v1098_v22, %v404_v6 }
 0x155   :  { %v447_v58 = vadd.f32 %v431_v43, %v347_v51 }
 0x157   :  { %v232_v33 = vpop.permute.xlu1 %231  ;;  %v547_v31 = vadd.f32 %v531_v15, %v447_v58 }
 0x158   :  { %v249_v1 = vadd.f32 %v232_v33, %v153_v19 }
 0x159   :  { %v563_v18 = vmax.f32 %v547_v31, 0.0 }
 0x15c   :  { %v312_v35 = vpop.permute.xlu1 %311 }
 0x15d   :  { %v333_v52 = vmul.f32 %v1094_v17, %v312_v35 }
 0x15f   :  { %v349_v24 = vadd.f32 %v333_v52, %v249_v1 }
 0x161   :  { %v500_v37 = vpop.permute.xlu1 %499 }
 0x162   :  { %v530_v48 = vmul.f32 %v1116_v5, %v500_v37 }
 0x164   :  { %v546_v4 = vadd.f32 %v530_v48, %v446_v61 }
 0x166   :  { %v562_v62 = vmax.f32 %v546_v4, 0.0  ;;  %v408_v49 = vpop.permute.xlu1 %407 }
 0x167   :  { %v432_v7 = vmul.f32 %v1098_v22, %v408_v49  ;;  %v571_v27 = vpop.permute.xlu0 %570 }
 0x168   :  { %v729_v54 = vpack.c.bf16 %v563_v18, %v562_v62 }
 0x169   :  { %v448_v2 = vadd.f32 %v432_v7, %v348_v40 }
 0x16a   :  { %v412_v45 = vpop.permute.xlu1 %411  ;;  %730 = vmatpush3.bf16.msra.mxu0 %v729_v54 }
 0x16b   :  { %731 = vmatprep.subr.bf16.mxu0 %v814_v28  ;;  %v433_v21 = vmul.f32 %v1098_v22, %v412_v45  ;;  %v548_v47 = vadd.f32 %v532_v11, %v448_v2  ;;  %v566_v28 = vld [vmem:[%s1248_s3] sm:$0x3] }
 0x16d   :  { %v449_v25 = vadd.f32 %v433_v21, %v349_v24  ;;  %v564_v17 = vmax.f32 %v548_v47, 0.0 }
 0x16f   :  { %v512_v26 = vpop.permute.xlu1 %511 }
 0x170   :  { %v533_v63 = vmul.f32 %v1116_v5, %v512_v26 }
 0x172   :  { %v549_v12 = vadd.f32 %v533_v63, %v449_v25 }
 0x174   :  { %v565_v60 = vmax.f32 %v549_v12, 0.0 }
 0x176   :  { %v732_v16 = vpack.c.bf16 %v565_v60, %v564_v17 }
 0x178   :  { %733 = vmatpush3.bf16.msra.mxu0 %v732_v16 }
 0x17b   :  { %708 = vmatmul.mubr.f32.vlgmr.msra.gmra.mrb[0].mxu0 %v566_v28 }
 0x24e   :  { %v639_v22 = vpop.f32.mrb[0].mxu0 }
 0x24f   :  { %v640_v23 = vadd.f32 %v639_v22, %v571_v27  ;;  %v709_v29 = vpop.f32.mrb[1].mxu0 }
 0x251   :  { %643 = vst [vmem:[#allocation2] sm:$0x3] %v640_v23 }
 0x252   :  { %797 = shalt.err (!%p794_p4)
}
 0x253   :  { %s798_s3 = scalar_lea.hbm %s1250_s5, 32 }
 0x254   :  { %p799_p5 = scmp.ne.s32.totalorder %s1250_s5, %s798_s3  ;;  %p802_p6 = scmp.lt.u32.totalorder %s798_s3, %s1250_s5 }
 0x256   :  { %p804_p7 = pnand %p802_p6, %p799_p5 }
 0x258   :  { %807 = shalt.err (!%p804_p7)
}
 0x259   :  { %653 = dma.vmem_to_hbm [thread:$0]  %s651_s10, 32, %s1250_s5, [#allocation3]  }
 0x25a   :  { %808 = dma.done.wait [#allocation3], 32  }
 0x25b   :  { %809 = vsyncadd [#allocation3], 4294967264 }
 0x25c   :  { %657 = vsyncpa [#allocation3], 1 }

</bundles_post_ra>
